<compile_context>
chip_gen: v7x
topology: tpu7x:2x2x1
jax: 0.10.0
libtpu: 0.0.40
codegen_flags: <defaults>
</compile_context>

<pallas_src>
import functools

import jax
import jax.numpy as jnp
from jax.experimental import pallas as pl
from jax.experimental.pallas import tpu as pltpu

HIDDEN_L1 = 10
_LANE = 128


def _round_up(n, m):
    return ((n + m - 1) // m) * m


def _mlp_kernel(p_ref, xT_ref, o_ref, *, input_dim, hidden, out_dim):
    """One batch tile.

    p_ref  : (P,) f32 in SMEM — packed parameters:
               [0 : input_dim*hidden)        w1, row-major, p[k*hidden + j] = w1[k, j]
               [.. : +hidden)                b1
               [.. : +hidden*out_dim)        w2, row-major, p[j*out_dim + n] = w2[j, n]
               [.. : +out_dim)               b2
    xT_ref : (input_dim, TB) f32 in VMEM — transposed batch tile (batch on lanes).
    o_ref  : (out_dim,   TB) f32 in VMEM — transposed, lane-dense output tile.
    """
    w1_off = 0
    b1_off = input_dim * hidden
    w2_off = b1_off + hidden
    b2_off = w2_off + hidden * out_dim

    xT = xT_ref[...]  # (input_dim, TB)

    # Output accumulators: one lane-dense (1, TB) row per output unit.
    y = [None] * out_dim

    # Stream over hidden units on the VPU: build h_j, fold it into every output
    # accumulator, then drop it (keeps vreg pressure low; no MXU round-trip).
    for j in range(hidden):
        # fc1 row j:  h_j[b] = relu( sum_k w1[k, j] * x[b, k] + b1[j] )
        h_j = p_ref[w1_off + j] * xT[0:1, :]                     # k = 0 term
        for k in range(1, input_dim):
            h_j = h_j + p_ref[w1_off + k * hidden + j] * xT[k:k + 1, :]
        h_j = jnp.maximum(h_j + p_ref[b1_off + j], 0.0)

        # fc2 accumulate:  y[n] += w2[j, n] * h_j
        for n in range(out_dim):
            term = p_ref[w2_off + j * out_dim + n] * h_j
            y[n] = term if y[n] is None else y[n] + term

    # Epilogue: bias + sigmoid (exp on EUP, reciprocal), fused into the store.
    for n in range(out_dim):
        z = y[n] + p_ref[b2_off + n]
        o_ref[n:n + 1, :] = pl.reciprocal(1.0 + jnp.exp(-z), approx=False).astype(o_ref.dtype)


def pack_params(w1, b1, w2, b2):
    """Pack all parameters into one contiguous f32 vector (single SMEM operand)."""
    return jnp.concatenate([
        w1.reshape(-1).astype(jnp.float32),   # (input_dim*hidden,)  row-major (k, j)
        b1.reshape(-1).astype(jnp.float32),   # (hidden,)
        w2.reshape(-1).astype(jnp.float32),   # (hidden*out_dim,)    row-major (j, n)
        b2.reshape(-1).astype(jnp.float32),   # (out_dim,)
    ])


def banknote_forward(x, w1, b1, w2, b2, *, batch_tile=1024):
    """Fused MLP forward.  All compute happens inside a single Pallas kernel.

    x:  (B, input_dim)  float32
    w1: (input_dim, H)  float32   (PyTorch fc1.weight.T)
    b1: (1, H)          float32
    w2: (H, output_dim) float32   (PyTorch fc2.weight.T)
    b2: (1, output_dim) float32
    returns (B, output_dim) float32
    """
    B, input_dim = x.shape
    hidden = w1.shape[1]
    out_dim = w2.shape[1]

    params = pack_params(w1, b1, w2, b2)

    # Batch tile along the 128-lane axis; pad B so the grid divides evenly.
    tb = min(batch_tile, max(_LANE, _round_up(B, _LANE)))
    tb = _round_up(tb, _LANE)
    b_pad = _round_up(B, tb)

    # Transposed, zero-padded input: (input_dim, B_pad) with batch on lanes.
    xT = jnp.zeros((input_dim, b_pad), jnp.float32).at[:, :B].set(x.T.astype(jnp.float32))

    kernel = functools.partial(
        _mlp_kernel, input_dim=input_dim, hidden=hidden, out_dim=out_dim)

    yT = pl.pallas_call(
        kernel,
        out_shape=jax.ShapeDtypeStruct((out_dim, b_pad), jnp.float32),
        grid=(b_pad // tb,),
        in_specs=[
            # Packed parameters: whole array, resident in SMEM for the full call.
            pl.BlockSpec(memory_space=pltpu.MemorySpace.SMEM),
            # Batch tile of x^T: lane-dense (input_dim, TB) blocks, pipelined.
            pl.BlockSpec((input_dim, tb), lambda i: (0, i)),
        ],
        # Lane-dense output tile (out_dim, TB); TB is a multiple of 128.
        out_specs=pl.BlockSpec((out_dim, tb), lambda i: (0, i)),
        compiler_params=pltpu.CompilerParams(
            dimension_semantics=("parallel",),   # shard batch tiles across v7x's 2 TCs
        ),
    )(params, xT)

    # Undo padding / transposition: (B, out_dim), matching the PyTorch module.
    return yT[:, :B].T


def init_params(key, input_dim, output_dim):
    """Deterministic synthetic parameters matching the PyTorch module's shapes."""
    k1, k2, k3, k4 = jax.random.split(key, 4)
    # PyTorch Linear stores weight as (out, in); we keep the transposed (in, out)
    # layout so y = x @ W + b matches x @ weight.T + bias.
    w1 = jax.random.normal(k1, (input_dim, HIDDEN_L1), jnp.float32) * 0.1
    b1 = jax.random.normal(k2, (1, HIDDEN_L1), jnp.float32) * 0.1
    w2 = jax.random.normal(k3, (HIDDEN_L1, output_dim), jnp.float32) * 0.1
    b2 = jax.random.normal(k4, (1, output_dim), jnp.float32) * 0.1
    return w1, b1, w2, b2


def reference_forward(x, w1, b1, w2, b2):
    h = jnp.maximum(x @ w1 + b1, 0.0)
    return jax.nn.sigmoid(h @ w2 + b2)


if __name__ == "__main__":
    # Banknote-authentication-like shapes: 4 input features, 1 output logit.
    batch, input_dim, output_dim = 8, 4, 1

    key = jax.random.PRNGKey(0)
    kx, kp = jax.random.split(key)
    x = jax.random.normal(kx, (batch, input_dim), jnp.float32)
    w1, b1, w2, b2 = init_params(kp, input_dim, output_dim)

    out = banknote_forward(x, w1, b1, w2, b2)
    out = jax.block_until_ready(out)

    ref = reference_forward(x, w1, b1, w2, b2)
    assert out.shape == (batch, output_dim)
    assert jnp.allclose(out, ref, atol=1e-5, rtol=1e-5), "mismatch vs JAX reference"

    print("KERNEL_OK")
</pallas_src>

<mosaic_0001>
module attributes {stable_mosaic.version = 11 : i64} {
  func.func @_mlp_kernel(%arg0: i32, %arg1: memref<61xf32, #tpu.memory_space<smem>>, %arg2: memref<4x128xf32, #tpu.memory_space<vmem>>, %arg3: memref<1x128xf32, #tpu.memory_space<vmem>>) attributes {dimension_semantics = [#tpu.dimension_semantics<parallel>], iteration_bounds = array<i64: 1>, scalar_prefetch = 0 : i64, scratch_operands = 0 : i64, tpu.core_type = #tpu.core_type<tc>, window_params = [{transform_indices = @transform_0, window_bounds = array<i64: 61>}, {transform_indices = @transform_1, window_bounds = array<i64: 4, 128>}, {transform_indices = @transform_2, window_bounds = array<i64: 1, 128>}]} {
    %c0 = arith.constant 0 : index
    %c0_0 = arith.constant 0 : index
    %0 = vector.load %arg2[%c0, %c0_0] : memref<4x128xf32, #tpu.memory_space<vmem>>, vector<4x128xf32>
    %c0_1 = arith.constant 0 : index
    %1 = memref.load %arg1[%c0_1] : memref<61xf32, #tpu.memory_space<smem>>
    %2 = vector.extract_strided_slice %0 {offsets = [0, 0], sizes = [1, 128], strides = [1, 1]} : vector<4x128xf32> to vector<1x128xf32>
    %3 = vector.broadcast %1 : f32 to vector<1x128xf32>
    %4 = arith.mulf %3, %2 : vector<1x128xf32>
    %c10 = arith.constant 10 : index
    %5 = memref.load %arg1[%c10] : memref<61xf32, #tpu.memory_space<smem>>
    %6 = vector.extract_strided_slice %0 {offsets = [1, 0], sizes = [1, 128], strides = [1, 1]} : vector<4x128xf32> to vector<1x128xf32>
    %7 = vector.broadcast %5 : f32 to vector<1x128xf32>
    %8 = arith.mulf %7, %6 : vector<1x128xf32>
    %9 = arith.addf %4, %8 : vector<1x128xf32>
    %c20 = arith.constant 20 : index
    %10 = memref.load %arg1[%c20] : memref<61xf32, #tpu.memory_space<smem>>
    %11 = vector.extract_strided_slice %0 {offsets = [2, 0], sizes = [1, 128], strides = [1, 1]} : vector<4x128xf32> to vector<1x128xf32>
    %12 = vector.broadcast %10 : f32 to vector<1x128xf32>
    %13 = arith.mulf %12, %11 : vector<1x128xf32>
    %14 = arith.addf %9, %13 : vector<1x128xf32>
    %c30 = arith.constant 30 : index
    %15 = memref.load %arg1[%c30] : memref<61xf32, #tpu.memory_space<smem>>
    %16 = vector.extract_strided_slice %0 {offsets = [3, 0], sizes = [1, 128], strides = [1, 1]} : vector<4x128xf32> to vector<1x128xf32>
    %17 = vector.broadcast %15 : f32 to vector<1x128xf32>
    %18 = arith.mulf %17, %16 : vector<1x128xf32>
    %19 = arith.addf %14, %18 : vector<1x128xf32>
    %c40 = arith.constant 40 : index
    %20 = memref.load %arg1[%c40] : memref<61xf32, #tpu.memory_space<smem>>
    %21 = vector.broadcast %20 : f32 to vector<1x128xf32>
    %22 = arith.addf %19, %21 : vector<1x128xf32>
    %cst = arith.constant 0.000000e+00 : f32
    %23 = vector.broadcast %cst : f32 to vector<1x128xf32>
    %24 = arith.maximumf %22, %23 : vector<1x128xf32>
    %c50 = arith.constant 50 : index
    %25 = memref.load %arg1[%c50] : memref<61xf32, #tpu.memory_space<smem>>
    %26 = vector.broadcast %25 : f32 to vector<1x128xf32>
    %27 = arith.mulf %26, %24 : vector<1x128xf32>
    %c1 = arith.constant 1 : index
    %28 = memref.load %arg1[%c1] : memref<61xf32, #tpu.memory_space<smem>>
    %29 = vector.extract_strided_slice %0 {offsets = [0, 0], sizes = [1, 128], strides = [1, 1]} : vector<4x128xf32> to vector<1x128xf32>
    %30 = vector.broadcast %28 : f32 to vector<1x128xf32>
    %31 = arith.mulf %30, %29 : vector<1x128xf32>
    %c11 = arith.constant 11 : index
    %32 = memref.load %arg1[%c11] : memref<61xf32, #tpu.memory_space<smem>>
    %33 = vector.extract_strided_slice %0 {offsets = [1, 0], sizes = [1, 128], strides = [1, 1]} : vector<4x128xf32> to vector<1x128xf32>
    %34 = vector.broadcast %32 : f32 to vector<1x128xf32>
    %35 = arith.mulf %34, %33 : vector<1x128xf32>
    %36 = arith.addf %31, %35 : vector<1x128xf32>
    %c21 = arith.constant 21 : index
    %37 = memref.load %arg1[%c21] : memref<61xf32, #tpu.memory_space<smem>>
    %38 = vector.extract_strided_slice %0 {offsets = [2, 0], sizes = [1, 128], strides = [1, 1]} : vector<4x128xf32> to vector<1x128xf32>
    %39 = vector.broadcast %37 : f32 to vector<1x128xf32>
    %40 = arith.mulf %39, %38 : vector<1x128xf32>
    %41 = arith.addf %36, %40 : vector<1x128xf32>
    %c31 = arith.constant 31 : index
    %42 = memref.load %arg1[%c31] : memref<61xf32, #tpu.memory_space<smem>>
    %43 = vector.extract_strided_slice %0 {offsets = [3, 0], sizes = [1, 128], strides = [1, 1]} : vector<4x128xf32> to vector<1x128xf32>
    %44 = vector.broadcast %42 : f32 to vector<1x128xf32>
    %45 = arith.mulf %44, %43 : vector<1x128xf32>
    %46 = arith.addf %41, %45 : vector<1x128xf32>
    %c41 = arith.constant 41 : index
    %47 = memref.load %arg1[%c41] : memref<61xf32, #tpu.memory_space<smem>>
    %48 = vector.broadcast %47 : f32 to vector<1x128xf32>
    %49 = arith.addf %46, %48 : vector<1x128xf32>
    %cst_2 = arith.constant 0.000000e+00 : f32
    %50 = vector.broadcast %cst_2 : f32 to vector<1x128xf32>
    %51 = arith.maximumf %49, %50 : vector<1x128xf32>
    %c51 = arith.constant 51 : index
    %52 = memref.load %arg1[%c51] : memref<61xf32, #tpu.memory_space<smem>>
    %53 = vector.broadcast %52 : f32 to vector<1x128xf32>
    %54 = arith.mulf %53, %51 : vector<1x128xf32>
    %55 = arith.addf %27, %54 : vector<1x128xf32>
    %c2 = arith.constant 2 : index
    %56 = memref.load %arg1[%c2] : memref<61xf32, #tpu.memory_space<smem>>
    %57 = vector.extract_strided_slice %0 {offsets = [0, 0], sizes = [1, 128], strides = [1, 1]} : vector<4x128xf32> to vector<1x128xf32>
    %58 = vector.broadcast %56 : f32 to vector<1x128xf32>
    %59 = arith.mulf %58, %57 : vector<1x128xf32>
    %c12 = arith.constant 12 : index
    %60 = memref.load %arg1[%c12] : memref<61xf32, #tpu.memory_space<smem>>
    %61 = vector.extract_strided_slice %0 {offsets = [1, 0], sizes = [1, 128], strides = [1, 1]} : vector<4x128xf32> to vector<1x128xf32>
    %62 = vector.broadcast %60 : f32 to vector<1x128xf32>
    %63 = arith.mulf %62, %61 : vector<1x128xf32>
    %64 = arith.addf %59, %63 : vector<1x128xf32>
    %c22 = arith.constant 22 : index
    %65 = memref.load %arg1[%c22] : memref<61xf32, #tpu.memory_space<smem>>
    %66 = vector.extract_strided_slice %0 {offsets = [2, 0], sizes = [1, 128], strides = [1, 1]} : vector<4x128xf32> to vector<1x128xf32>
    %67 = vector.broadcast %65 : f32 to vector<1x128xf32>
    %68 = arith.mulf %67, %66 : vector<1x128xf32>
    %69 = arith.addf %64, %68 : vector<1x128xf32>
    %c32 = arith.constant 32 : index
    %70 = memref.load %arg1[%c32] : memref<61xf32, #tpu.memory_space<smem>>
    %71 = vector.extract_strided_slice %0 {offsets = [3, 0], sizes = [1, 128], strides = [1, 1]} : vector<4x128xf32> to vector<1x128xf32>
    %72 = vector.broadcast %70 : f32 to vector<1x128xf32>
    %73 = arith.mulf %72, %71 : vector<1x128xf32>
    %74 = arith.addf %69, %73 : vector<1x128xf32>
    %c42 = arith.constant 42 : index
    %75 = memref.load %arg1[%c42] : memref<61xf32, #tpu.memory_space<smem>>
    %76 = vector.broadcast %75 : f32 to vector<1x128xf32>
    %77 = arith.addf %74, %76 : vector<1x128xf32>
    %cst_3 = arith.constant 0.000000e+00 : f32
    %78 = vector.broadcast %cst_3 : f32 to vector<1x128xf32>
    %79 = arith.maximumf %77, %78 : vector<1x128xf32>
    %c52 = arith.constant 52 : index
    %80 = memref.load %arg1[%c52] : memref<61xf32, #tpu.memory_space<smem>>
    %81 = vector.broadcast %80 : f32 to vector<1x128xf32>
    %82 = arith.mulf %81, %79 : vector<1x128xf32>
    %83 = arith.addf %55, %82 : vector<1x128xf32>
    %c3 = arith.constant 3 : index
    %84 = memref.load %arg1[%c3] : memref<61xf32, #tpu.memory_space<smem>>
    %85 = vector.extract_strided_slice %0 {offsets = [0, 0], sizes = [1, 128], strides = [1, 1]} : vector<4x128xf32> to vector<1x128xf32>
    %86 = vector.broadcast %84 : f32 to vector<1x128xf32>
    %87 = arith.mulf %86, %85 : vector<1x128xf32>
    %c13 = arith.constant 13 : index
    %88 = memref.load %arg1[%c13] : memref<61xf32, #tpu.memory_space<smem>>
    %89 = vector.extract_strided_slice %0 {offsets = [1, 0], sizes = [1, 128], strides = [1, 1]} : vector<4x128xf32> to vector<1x128xf32>
    %90 = vector.broadcast %88 : f32 to vector<1x128xf32>
    %91 = arith.mulf %90, %89 : vector<1x128xf32>
    %92 = arith.addf %87, %91 : vector<1x128xf32>
    %c23 = arith.constant 23 : index
    %93 = memref.load %arg1[%c23] : memref<61xf32, #tpu.memory_space<smem>>
    %94 = vector.extract_strided_slice %0 {offsets = [2, 0], sizes = [1, 128], strides = [1, 1]} : vector<4x128xf32> to vector<1x128xf32>
    %95 = vector.broadcast %93 : f32 to vector<1x128xf32>
    %96 = arith.mulf %95, %94 : vector<1x128xf32>
    %97 = arith.addf %92, %96 : vector<1x128xf32>
    %c33 = arith.constant 33 : index
    %98 = memref.load %arg1[%c33] : memref<61xf32, #tpu.memory_space<smem>>
    %99 = vector.extract_strided_slice %0 {offsets = [3, 0], sizes = [1, 128], strides = [1, 1]} : vector<4x128xf32> to vector<1x128xf32>
    %100 = vector.broadcast %98 : f32 to vector<1x128xf32>
    %101 = arith.mulf %100, %99 : vector<1x128xf32>
    %102 = arith.addf %97, %101 : vector<1x128xf32>
    %c43 = arith.constant 43 : index
    %103 = memref.load %arg1[%c43] : memref<61xf32, #tpu.memory_space<smem>>
    %104 = vector.broadcast %103 : f32 to vector<1x128xf32>
    %105 = arith.addf %102, %104 : vector<1x128xf32>
    %cst_4 = arith.constant 0.000000e+00 : f32
    %106 = vector.broadcast %cst_4 : f32 to vector<1x128xf32>
    %107 = arith.maximumf %105, %106 : vector<1x128xf32>
    %c53 = arith.constant 53 : index
    %108 = memref.load %arg1[%c53] : memref<61xf32, #tpu.memory_space<smem>>
    %109 = vector.broadcast %108 : f32 to vector<1x128xf32>
    %110 = arith.mulf %109, %107 : vector<1x128xf32>
    %111 = arith.addf %83, %110 : vector<1x128xf32>
    %c4 = arith.constant 4 : index
    %112 = memref.load %arg1[%c4] : memref<61xf32, #tpu.memory_space<smem>>
    %113 = vector.extract_strided_slice %0 {offsets = [0, 0], sizes = [1, 128], strides = [1, 1]} : vector<4x128xf32> to vector<1x128xf32>
    %114 = vector.broadcast %112 : f32 to vector<1x128xf32>
    %115 = arith.mulf %114, %113 : vector<1x128xf32>
    %c14 = arith.constant 14 : index
    %116 = memref.load %arg1[%c14] : memref<61xf32, #tpu.memory_space<smem>>
    %117 = vector.extract_strided_slice %0 {offsets = [1, 0], sizes = [1, 128], strides = [1, 1]} : vector<4x128xf32> to vector<1x128xf32>
    %118 = vector.broadcast %116 : f32 to vector<1x128xf32>
    %119 = arith.mulf %118, %117 : vector<1x128xf32>
    %120 = arith.addf %115, %119 : vector<1x128xf32>
    %c24 = arith.constant 24 : index
    %121 = memref.load %arg1[%c24] : memref<61xf32, #tpu.memory_space<smem>>
    %122 = vector.extract_strided_slice %0 {offsets = [2, 0], sizes = [1, 128], strides = [1, 1]} : vector<4x128xf32> to vector<1x128xf32>
    %123 = vector.broadcast %121 : f32 to vector<1x128xf32>
    %124 = arith.mulf %123, %122 : vector<1x128xf32>
    %125 = arith.addf %120, %124 : vector<1x128xf32>
    %c34 = arith.constant 34 : index
    %126 = memref.load %arg1[%c34] : memref<61xf32, #tpu.memory_space<smem>>
    %127 = vector.extract_strided_slice %0 {offsets = [3, 0], sizes = [1, 128], strides = [1, 1]} : vector<4x128xf32> to vector<1x128xf32>
    %128 = vector.broadcast %126 : f32 to vector<1x128xf32>
    %129 = arith.mulf %128, %127 : vector<1x128xf32>
    %130 = arith.addf %125, %129 : vector<1x128xf32>
    %c44 = arith.constant 44 : index
    %131 = memref.load %arg1[%c44] : memref<61xf32, #tpu.memory_space<smem>>
    %132 = vector.broadcast %131 : f32 to vector<1x128xf32>
    %133 = arith.addf %130, %132 : vector<1x128xf32>
    %cst_5 = arith.constant 0.000000e+00 : f32
    %134 = vector.broadcast %cst_5 : f32 to vector<1x128xf32>
    %135 = arith.maximumf %133, %134 : vector<1x128xf32>
    %c54 = arith.constant 54 : index
    %136 = memref.load %arg1[%c54] : memref<61xf32, #tpu.memory_space<smem>>
    %137 = vector.broadcast %136 : f32 to vector<1x128xf32>
    %138 = arith.mulf %137, %135 : vector<1x128xf32>
    %139 = arith.addf %111, %138 : vector<1x128xf32>
    %c5 = arith.constant 5 : index
    %140 = memref.load %arg1[%c5] : memref<61xf32, #tpu.memory_space<smem>>
    %141 = vector.extract_strided_slice %0 {offsets = [0, 0], sizes = [1, 128], strides = [1, 1]} : vector<4x128xf32> to vector<1x128xf32>
    %142 = vector.broadcast %140 : f32 to vector<1x128xf32>
    %143 = arith.mulf %142, %141 : vector<1x128xf32>
    %c15 = arith.constant 15 : index
    %144 = memref.load %arg1[%c15] : memref<61xf32, #tpu.memory_space<smem>>
    %145 = vector.extract_strided_slice %0 {offsets = [1, 0], sizes = [1, 128], strides = [1, 1]} : vector<4x128xf32> to vector<1x128xf32>
    %146 = vector.broadcast %144 : f32 to vector<1x128xf32>
    %147 = arith.mulf %146, %145 : vector<1x128xf32>
    %148 = arith.addf %143, %147 : vector<1x128xf32>
    %c25 = arith.constant 25 : index
    %149 = memref.load %arg1[%c25] : memref<61xf32, #tpu.memory_space<smem>>
    %150 = vector.extract_strided_slice %0 {offsets = [2, 0], sizes = [1, 128], strides = [1, 1]} : vector<4x128xf32> to vector<1x128xf32>
    %151 = vector.broadcast %149 : f32 to vector<1x128xf32>
    %152 = arith.mulf %151, %150 : vector<1x128xf32>
    %153 = arith.addf %148, %152 : vector<1x128xf32>
    %c35 = arith.constant 35 : index
    %154 = memref.load %arg1[%c35] : memref<61xf32, #tpu.memory_space<smem>>
    %155 = vector.extract_strided_slice %0 {offsets = [3, 0], sizes = [1, 128], strides = [1, 1]} : vector<4x128xf32> to vector<1x128xf32>
    %156 = vector.broadcast %154 : f32 to vector<1x128xf32>
    %157 = arith.mulf %156, %155 : vector<1x128xf32>
    %158 = arith.addf %153, %157 : vector<1x128xf32>
    %c45 = arith.constant 45 : index
    %159 = memref.load %arg1[%c45] : memref<61xf32, #tpu.memory_space<smem>>
    %160 = vector.broadcast %159 : f32 to vector<1x128xf32>
    %161 = arith.addf %158, %160 : vector<1x128xf32>
    %cst_6 = arith.constant 0.000000e+00 : f32
    %162 = vector.broadcast %cst_6 : f32 to vector<1x128xf32>
    %163 = arith.maximumf %161, %162 : vector<1x128xf32>
    %c55 = arith.constant 55 : index
    %164 = memref.load %arg1[%c55] : memref<61xf32, #tpu.memory_space<smem>>
    %165 = vector.broadcast %164 : f32 to vector<1x128xf32>
    %166 = arith.mulf %165, %163 : vector<1x128xf32>
    %167 = arith.addf %139, %166 : vector<1x128xf32>
    %c6 = arith.constant 6 : index
    %168 = memref.load %arg1[%c6] : memref<61xf32, #tpu.memory_space<smem>>
    %169 = vector.extract_strided_slice %0 {offsets = [0, 0], sizes = [1, 128], strides = [1, 1]} : vector<4x128xf32> to vector<1x128xf32>
    %170 = vector.broadcast %168 : f32 to vector<1x128xf32>
    %171 = arith.mulf %170, %169 : vector<1x128xf32>
    %c16 = arith.constant 16 : index
    %172 = memref.load %arg1[%c16] : memref<61xf32, #tpu.memory_space<smem>>
    %173 = vector.extract_strided_slice %0 {offsets = [1, 0], sizes = [1, 128], strides = [1, 1]} : vector<4x128xf32> to vector<1x128xf32>
    %174 = vector.broadcast %172 : f32 to vector<1x128xf32>
    %175 = arith.mulf %174, %173 : vector<1x128xf32>
    %176 = arith.addf %171, %175 : vector<1x128xf32>
    %c26 = arith.constant 26 : index
    %177 = memref.load %arg1[%c26] : memref<61xf32, #tpu.memory_space<smem>>
    %178 = vector.extract_strided_slice %0 {offsets = [2, 0], sizes = [1, 128], strides = [1, 1]} : vector<4x128xf32> to vector<1x128xf32>
    %179 = vector.broadcast %177 : f32 to vector<1x128xf32>
    %180 = arith.mulf %179, %178 : vector<1x128xf32>
    %181 = arith.addf %176, %180 : vector<1x128xf32>
    %c36 = arith.constant 36 : index
    %182 = memref.load %arg1[%c36] : memref<61xf32, #tpu.memory_space<smem>>
    %183 = vector.extract_strided_slice %0 {offsets = [3, 0], sizes = [1, 128], strides = [1, 1]} : vector<4x128xf32> to vector<1x128xf32>
    %184 = vector.broadcast %182 : f32 to vector<1x128xf32>
    %185 = arith.mulf %184, %183 : vector<1x128xf32>
    %186 = arith.addf %181, %185 : vector<1x128xf32>
    %c46 = arith.constant 46 : index
    %187 = memref.load %arg1[%c46] : memref<61xf32, #tpu.memory_space<smem>>
    %188 = vector.broadcast %187 : f32 to vector<1x128xf32>
    %189 = arith.addf %186, %188 : vector<1x128xf32>
    %cst_7 = arith.constant 0.000000e+00 : f32
    %190 = vector.broadcast %cst_7 : f32 to vector<1x128xf32>
    %191 = arith.maximumf %189, %190 : vector<1x128xf32>
    %c56 = arith.constant 56 : index
    %192 = memref.load %arg1[%c56] : memref<61xf32, #tpu.memory_space<smem>>
    %193 = vector.broadcast %192 : f32 to vector<1x128xf32>
    %194 = arith.mulf %193, %191 : vector<1x128xf32>
    %195 = arith.addf %167, %194 : vector<1x128xf32>
    %c7 = arith.constant 7 : index
    %196 = memref.load %arg1[%c7] : memref<61xf32, #tpu.memory_space<smem>>
    %197 = vector.extract_strided_slice %0 {offsets = [0, 0], sizes = [1, 128], strides = [1, 1]} : vector<4x128xf32> to vector<1x128xf32>
    %198 = vector.broadcast %196 : f32 to vector<1x128xf32>
    %199 = arith.mulf %198, %197 : vector<1x128xf32>
    %c17 = arith.constant 17 : index
    %200 = memref.load %arg1[%c17] : memref<61xf32, #tpu.memory_space<smem>>
    %201 = vector.extract_strided_slice %0 {offsets = [1, 0], sizes = [1, 128], strides = [1, 1]} : vector<4x128xf32> to vector<1x128xf32>
    %202 = vector.broadcast %200 : f32 to vector<1x128xf32>
    %203 = arith.mulf %202, %201 : vector<1x128xf32>
    %204 = arith.addf %199, %203 : vector<1x128xf32>
    %c27 = arith.constant 27 : index
    %205 = memref.load %arg1[%c27] : memref<61xf32, #tpu.memory_space<smem>>
    %206 = vector.extract_strided_slice %0 {offsets = [2, 0], sizes = [1, 128], strides = [1, 1]} : vector<4x128xf32> to vector<1x128xf32>
    %207 = vector.broadcast %205 : f32 to vector<1x128xf32>
    %208 = arith.mulf %207, %206 : vector<1x128xf32>
    %209 = arith.addf %204, %208 : vector<1x128xf32>
    %c37 = arith.constant 37 : index
    %210 = memref.load %arg1[%c37] : memref<61xf32, #tpu.memory_space<smem>>
    %211 = vector.extract_strided_slice %0 {offsets = [3, 0], sizes = [1, 128], strides = [1, 1]} : vector<4x128xf32> to vector<1x128xf32>
    %212 = vector.broadcast %210 : f32 to vector<1x128xf32>
    %213 = arith.mulf %212, %211 : vector<1x128xf32>
    %214 = arith.addf %209, %213 : vector<1x128xf32>
    %c47 = arith.constant 47 : index
    %215 = memref.load %arg1[%c47] : memref<61xf32, #tpu.memory_space<smem>>
    %216 = vector.broadcast %215 : f32 to vector<1x128xf32>
    %217 = arith.addf %214, %216 : vector<1x128xf32>
    %cst_8 = arith.constant 0.000000e+00 : f32
    %218 = vector.broadcast %cst_8 : f32 to vector<1x128xf32>
    %219 = arith.maximumf %217, %218 : vector<1x128xf32>
    %c57 = arith.constant 57 : index
    %220 = memref.load %arg1[%c57] : memref<61xf32, #tpu.memory_space<smem>>
    %221 = vector.broadcast %220 : f32 to vector<1x128xf32>
    %222 = arith.mulf %221, %219 : vector<1x128xf32>
    %223 = arith.addf %195, %222 : vector<1x128xf32>
    %c8 = arith.constant 8 : index
    %224 = memref.load %arg1[%c8] : memref<61xf32, #tpu.memory_space<smem>>
    %225 = vector.extract_strided_slice %0 {offsets = [0, 0], sizes = [1, 128], strides = [1, 1]} : vector<4x128xf32> to vector<1x128xf32>
    %226 = vector.broadcast %224 : f32 to vector<1x128xf32>
    %227 = arith.mulf %226, %225 : vector<1x128xf32>
    %c18 = arith.constant 18 : index
    %228 = memref.load %arg1[%c18] : memref<61xf32, #tpu.memory_space<smem>>
    %229 = vector.extract_strided_slice %0 {offsets = [1, 0], sizes = [1, 128], strides = [1, 1]} : vector<4x128xf32> to vector<1x128xf32>
    %230 = vector.broadcast %228 : f32 to vector<1x128xf32>
    %231 = arith.mulf %230, %229 : vector<1x128xf32>
    %232 = arith.addf %227, %231 : vector<1x128xf32>
    %c28 = arith.constant 28 : index
    %233 = memref.load %arg1[%c28] : memref<61xf32, #tpu.memory_space<smem>>
    %234 = vector.extract_strided_slice %0 {offsets = [2, 0], sizes = [1, 128], strides = [1, 1]} : vector<4x128xf32> to vector<1x128xf32>
    %235 = vector.broadcast %233 : f32 to vector<1x128xf32>
    %236 = arith.mulf %235, %234 : vector<1x128xf32>
    %237 = arith.addf %232, %236 : vector<1x128xf32>
    %c38 = arith.constant 38 : index
    %238 = memref.load %arg1[%c38] : memref<61xf32, #tpu.memory_space<smem>>
    %239 = vector.extract_strided_slice %0 {offsets = [3, 0], sizes = [1, 128], strides = [1, 1]} : vector<4x128xf32> to vector<1x128xf32>
    %240 = vector.broadcast %238 : f32 to vector<1x128xf32>
    %241 = arith.mulf %240, %239 : vector<1x128xf32>
    %242 = arith.addf %237, %241 : vector<1x128xf32>
    %c48 = arith.constant 48 : index
    %243 = memref.load %arg1[%c48] : memref<61xf32, #tpu.memory_space<smem>>
    %244 = vector.broadcast %243 : f32 to vector<1x128xf32>
    %245 = arith.addf %242, %244 : vector<1x128xf32>
    %cst_9 = arith.constant 0.000000e+00 : f32
    %246 = vector.broadcast %cst_9 : f32 to vector<1x128xf32>
    %247 = arith.maximumf %245, %246 : vector<1x128xf32>
    %c58 = arith.constant 58 : index
    %248 = memref.load %arg1[%c58] : memref<61xf32, #tpu.memory_space<smem>>
    %249 = vector.broadcast %248 : f32 to vector<1x128xf32>
    %250 = arith.mulf %249, %247 : vector<1x128xf32>
    %251 = arith.addf %223, %250 : vector<1x128xf32>
    %c9 = arith.constant 9 : index
    %252 = memref.load %arg1[%c9] : memref<61xf32, #tpu.memory_space<smem>>
    %253 = vector.extract_strided_slice %0 {offsets = [0, 0], sizes = [1, 128], strides = [1, 1]} : vector<4x128xf32> to vector<1x128xf32>
    %254 = vector.broadcast %252 : f32 to vector<1x128xf32>
    %255 = arith.mulf %254, %253 : vector<1x128xf32>
    %c19 = arith.constant 19 : index
    %256 = memref.load %arg1[%c19] : memref<61xf32, #tpu.memory_space<smem>>
    %257 = vector.extract_strided_slice %0 {offsets = [1, 0], sizes = [1, 128], strides = [1, 1]} : vector<4x128xf32> to vector<1x128xf32>
    %258 = vector.broadcast %256 : f32 to vector<1x128xf32>
    %259 = arith.mulf %258, %257 : vector<1x128xf32>
    %260 = arith.addf %255, %259 : vector<1x128xf32>
    %c29 = arith.constant 29 : index
    %261 = memref.load %arg1[%c29] : memref<61xf32, #tpu.memory_space<smem>>
    %262 = vector.extract_strided_slice %0 {offsets = [2, 0], sizes = [1, 128], strides = [1, 1]} : vector<4x128xf32> to vector<1x128xf32>
    %263 = vector.broadcast %261 : f32 to vector<1x128xf32>
    %264 = arith.mulf %263, %262 : vector<1x128xf32>
    %265 = arith.addf %260, %264 : vector<1x128xf32>
    %c39 = arith.constant 39 : index
    %266 = memref.load %arg1[%c39] : memref<61xf32, #tpu.memory_space<smem>>
    %267 = vector.extract_strided_slice %0 {offsets = [3, 0], sizes = [1, 128], strides = [1, 1]} : vector<4x128xf32> to vector<1x128xf32>
    %268 = vector.broadcast %266 : f32 to vector<1x128xf32>
    %269 = arith.mulf %268, %267 : vector<1x128xf32>
    %270 = arith.addf %265, %269 : vector<1x128xf32>
    %c49 = arith.constant 49 : index
    %271 = memref.load %arg1[%c49] : memref<61xf32, #tpu.memory_space<smem>>
    %272 = vector.broadcast %271 : f32 to vector<1x128xf32>
    %273 = arith.addf %270, %272 : vector<1x128xf32>
    %cst_10 = arith.constant 0.000000e+00 : f32
    %274 = vector.broadcast %cst_10 : f32 to vector<1x128xf32>
    %275 = arith.maximumf %273, %274 : vector<1x128xf32>
    %c59 = arith.constant 59 : index
    %276 = memref.load %arg1[%c59] : memref<61xf32, #tpu.memory_space<smem>>
    %277 = vector.broadcast %276 : f32 to vector<1x128xf32>
    %278 = arith.mulf %277, %275 : vector<1x128xf32>
    %279 = arith.addf %251, %278 : vector<1x128xf32>
    %c60 = arith.constant 60 : index
    %280 = memref.load %arg1[%c60] : memref<61xf32, #tpu.memory_space<smem>>
    %281 = vector.broadcast %280 : f32 to vector<1x128xf32>
    %282 = arith.addf %279, %281 : vector<1x128xf32>
    %cst_11 = arith.constant 0.000000e+00 : f32
    %283 = vector.broadcast %cst_11 : f32 to vector<1x128xf32>
    %284 = arith.subf %283, %282 : vector<1x128xf32>
    %285 = math.exp %284 : vector<1x128xf32>
    %cst_12 = arith.constant 1.000000e+00 : f32
    %286 = vector.broadcast %cst_12 : f32 to vector<1x128xf32>
    %287 = arith.addf %286, %285 : vector<1x128xf32>
    %288 = tpu.reciprocal %287 : vector<1x128xf32> -> vector<1x128xf32>
    %c0_13 = arith.constant 0 : index
    %c0_14 = arith.constant 0 : index
    %289 = vector.load %arg3[%c0_13, %c0_14] : memref<1x128xf32, #tpu.memory_space<vmem>>, vector<1x128xf32>
    tpu.vector_store %arg3[%c0_13, %c0_14], %288 {strides = array<i32>} : memref<1x128xf32, #tpu.memory_space<vmem>>, vector<1x128xf32>,
    return
  }
  func.func @transform_0(%arg0: i32) -> i32 {
    %c0_i32 = arith.constant 0 : i32
    %c0_i32_0 = arith.constant 0 : i32
    return %c0_i32 : i32
  }
  func.func @transform_1(%arg0: i32) -> (i32, i32) {
    %c0_i32 = arith.constant 0 : i32
    %c0_i32_0 = arith.constant 0 : i32
    return %c0_i32, %arg0 : i32, i32
  }
  func.func @transform_2(%arg0: i32) -> (i32, i32) {
    %c0_i32 = arith.constant 0 : i32
    %c0_i32_0 = arith.constant 0 : i32
    return %c0_i32, %arg0 : i32, i32
  }
}

</mosaic_0001>

<bundles_post_ra>
// kernel: tpu_custom_call.1
= control target key start
LH: loop header
LB: loop body
LE: loop exit
PB: predicated region body
PF: predicated region fallthrough
CT: control target
= control target key end

     0   :  { %7 = vsyncpa [#allocation5], 0  ;;  %s759_s0 = inlined_call_operand.hbm [shape: f32[61], index: 0, kind: input, shape index: {}]   ;;  %s760_s1 = inlined_call_operand.hbm [shape: f32[4,128], index: 1, kind: input, shape index: {}]   ;;  %s761_s2 = inlined_call_operand.hbm [shape: f32[1,128], index: 2, kind: output, shape index: {}]  }
   0x1   :  { %8 = vsyncpa [#allocation3], 0 }
   0x2   :  { %9 = vsyncpa [#allocation4], 0  ;;  %s447_s11 = scalar_lea.hbm %s759_s0, 16 }
   0x3   :  { %p448_p0 = scmp.ne.s32.totalorder %s759_s0, %s447_s11  ;;  %p451_p1 = scmp.lt.u32.totalorder %s447_s11, %s759_s0 }
   0x5   :  { %p453_p2 = pnand %p451_p1, %p448_p0 }
   0x7   :  { %456 = shalt.err (!%p453_p2)
}
   0x8   :  { %s507_s16 = smov [#allocation2]   ;;  %s508_s19 = smov [#allocation6]  }
   0x9   :  { %17 = dma.hbm_to_smem %s759_s0, 16, %s507_s16, [#allocation5]  }
   0xa   :  { %s24_s20 = sshll.u32 %s508_s19, 4  ;;  %s457_s23 = scalar_lea.hbm %s760_s1, 64  ;;  %s25_s20 = int_to_ptr.vmem [resolvable:$true] %s24_s20 }
   0xb   :  { %p458_p3 = scmp.ne.s32.totalorder %s760_s1, %s457_s23  ;;  %p461_p4 = scmp.lt.u32.totalorder %s457_s23, %s760_s1 }
   0xd   :  { %p463_p5 = pnand %p461_p4, %p458_p3 }
   0xf   :  { %466 = shalt.err (!%p463_p5)
}
  0x10   :  { %s467_s28 = scalar_lea.vmem %s25_s20, 64  ;;  %p472_p7 = scmp.lt.s32.totalorder %s25_s20, %s25_s20 }
  0x11   :  { %p468_p6 = scmp.ne.s32.totalorder %s25_s20, %s467_s28  ;;  %p473_p8 = scmp.lt.s32.totalorder %s467_s28, %s467_s28 }
  0x13   :  { %p474_p9 = por %p473_p8, %p472_p7 }
  0x15   :  { %p475_p10 = pnand %p474_p9, %p468_p6 }
  0x17   :  { %478 = shalt.err (!%p475_p10)
}
  0x18   :  { %27 = dma.hbm_to_vmem [thread:$0]  %s760_s1, 64, %s25_s20, [#allocation3]  }
  0x19   :  { %501 = dma.done.wait [#allocation5], 16  }
  0x1a   :  { %502 = vsyncadd [#allocation5], 4294967280 }
  0x1b   :  { %503 = dma.done.wait [#allocation3], 64  }
  0x1c   :  { %504 = vsyncadd [#allocation3], 4294967232 }
  0x1d   :  { %34 = sfence }
  0x1e   :  { %s36_s30 = sld [smem:[#allocation2]]  ;;  %s380_s3 = sld [smem:[#allocation2 + $0xa]]  ;;  %v551_v0 = vld [vmem:[#allocation6] sm:$0xf] }
  0x1f   :  { %s381_s4 = sld [smem:[#allocation2 + $0x14]]  ;;  %s382_s5 = sld [smem:[#allocation2 + $0x1e]] }
  0x20   :  { %s549_s6 = sld [smem:[#allocation2 + $0x28]]  ;;  %s385_s7 = sld [smem:[#allocation2 + $0x1]] }
  0x21   :  { %s386_s8 = sld [smem:[#allocation2 + $0xb]]  ;;  %s553_s9 = sld [smem:[#allocation2 + $0x15]] }
  0x22   :  { %s555_s10 = sld [smem:[#allocation2 + $0x1f]]  ;;  %s557_s1 = sld [smem:[#allocation2 + $0x2]] }
  0x23   :  { %s559_s11 = sld [smem:[#allocation2 + $0xc]]  ;;  %s563_s12 = sld [smem:[#allocation2 + $0x16]] }
  0x24   :  { %v37_v1 = vstv %s36_s30  ;;  %v40_v2 = vstv %s380_s3  ;;  %s565_s13 = sld [smem:[#allocation2 + $0x20]]  ;;  %s569_s14 = sld [smem:[#allocation2 + $0x32]] }
  0x25   :  { %v38_v3 = vmul.f32 %v37_v1, %v551_v0  ;;  %v41_v4 = vmul.f32 %v40_v2, %v551_v0  ;;  %v47_v5 = vstv %s381_s4  ;;  %v54_v6 = vstv %s382_s5  ;;  %s571_s15 = sld [smem:[#allocation2 + $0x29]]  ;;  %s573_s16 = sld [smem:[#allocation2 + $0x3]] }
  0x26   :  { %v48_v7 = vmul.f32 %v47_v5, %v551_v0  ;;  %v55_v8 = vmul.f32 %v54_v6, %v551_v0  ;;  %v68_v10 = vstv %s385_s7  ;;  %s577_s17 = sld [smem:[#allocation2 + $0xd]]  ;;  %s581_s18 = sld [smem:[#allocation2 + $0x17]]  ;;  %v61_v19 = vstv %s549_s6 }
  0x27   :  { %v43_v9 = vrot.slane %v41_v4, 1  ;;  %v71_v11 = vstv %s386_s8  ;;  %v69_v13 = vmul.f32 %v68_v10, %v551_v0  ;;  %v78_v17 = vstv %s553_s9  ;;  %s586_s19 = sld [smem:[#allocation2 + $0x33]]  ;;  %s588_s20 = sld [smem:[#allocation2 + $0x21]] }
  0x28   :  { %v50_v12 = vrot.slane %v48_v7, 2  ;;  %v72_v14 = vmul.f32 %v71_v11, %v551_v0  ;;  %v57_v16 = vrot.slane %v55_v8, 3  ;;  %v85_v18 = vstv %s555_s10  ;;  %s593_s21 = sld [smem:[#allocation2 + $0x2a]]  ;;  %s596_s22 = sld [smem:[#allocation2 + $0x4]] }
  0x29   :  { %v45_v15 = vadd.f32 %v43_v9, %v38_v3  ;;  %v79_v21 = vmul.f32 %v78_v17, %v551_v0  ;;  %v86_v22 = vmul.f32 %v85_v18, %v551_v0  ;;  %v100_v24 = vstv %s557_s1  ;;  %s601_s23 = sld [smem:[#allocation2 + $0xe]]  ;;  %s606_s24 = sld [smem:[#allocation2 + $0x18]] }
  0x2a   :  { %v74_v20 = vrot.slane %v72_v14, 1  ;;  %v103_v25 = vstv %s559_s11  ;;  %v110_v26 = vstv %s563_s12  ;;  %v101_v30 = vmul.f32 %v100_v24, %v551_v0  ;;  %s608_s25 = sld [smem:[#allocation2 + $0x22]]  ;;  %s610_s26 = sld [smem:[#allocation2 + $0x34]] }
  0x2b   :  { %v52_v23 = vadd.f32 %v50_v12, %v45_v15  ;;  %v81_v28 = vrot.slane %v79_v21, 2  ;;  %v88_v29 = vrot.slane %v86_v22, 3  ;;  %v104_v32 = vmul.f32 %v103_v25, %v551_v0  ;;  %s615_s27 = sld [smem:[#allocation2 + $0x2b]]  ;;  %s617_s28 = sld [smem:[#allocation2 + $0x35]] }
  0x2c   :  { %v76_v27 = vadd.f32 %v74_v20, %v69_v13  ;;  %v111_v33 = vmul.f32 %v110_v26, %v551_v0  ;;  %v117_v34 = vstv %s565_s13  ;;  %v65_v35 = vstv %s569_s14  ;;  %s621_s0 = sld [smem:[#allocation2 + $0x5]]  ;;  %s626_s29 = sld [smem:[#allocation2 + $0xf]] }
  0x2d   :  { %v59_v31 = vadd.f32 %v57_v16, %v52_v23  ;;  %v92_v37 = vstv %s571_s15  ;;  %v118_v38 = vmul.f32 %v117_v34, %v551_v0  ;;  %v106_v40 = vrot.slane %v104_v32, 1  ;;  %s628_s30 = sld [smem:[#allocation2 + $0x19]]  ;;  %s633_s3 = sld [smem:[#allocation2 + $0x23]] }
  0x2e   :  { %v83_v36 = vadd.f32 %v81_v28, %v76_v27  ;;  %v113_v41 = vrot.slane %v111_v33, 2  ;;  %v132_v42 = vstv %s573_s16  ;;  %v135_v46 = vstv %s577_s17  ;;  %s636_s4 = sld [smem:[#allocation2 + $0x2c]]  ;;  %s641_s5 = sld [smem:[#allocation2 + $0x6]] }
  0x2f   :  { %v62_v39 = vadd.f32 %v61_v19, %v59_v31  ;;  %v120_v44 = vrot.slane %v118_v38, 3  ;;  %v133_v45 = vmul.f32 %v132_v42, %v551_v0  ;;  %v108_v48 = vadd.f32 %v106_v40, %v101_v30  ;;  %s645_s6 = sld [smem:[#allocation2 + $0x36]]  ;;  %s647_s7 = sld [smem:[#allocation2 + $0x10]] }
  0x30   :  { %v90_v43 = vadd.f32 %v88_v29, %v83_v36  ;;  %v136_v49 = vmul.f32 %v135_v46, %v551_v0  ;;  %v142_v50 = vstv %s581_s18  ;;  %v96_v52 = vstv %s586_s19  ;;  %s653_s8 = sld [smem:[#allocation2 + $0x1a]]  ;;  %s655_s9 = sld [smem:[#allocation2 + $0x24]] }
  0x31   :  { %v63_v47 = vmax.f32 %v62_v39, 0.0  ;;  %v143_v53 = vmul.f32 %v142_v50, %v551_v0  ;;  %v149_v54 = vstv %s588_s20  ;;  %v115_v55 = vadd.f32 %v113_v41, %v108_v48  ;;  %s660_s10 = sld [smem:[#allocation2 + $0x2d]]  ;;  %s662_s1 = sld [smem:[#allocation2 + $0x7]] }
  0x32   :  { %v93_v51 = vadd.f32 %v92_v37, %v90_v43  ;;  %v124_v56 = vstv %s593_s21  ;;  %v138_v57 = vrot.slane %v136_v49, 1  ;;  %v150_v58 = vmul.f32 %v149_v54, %v551_v0  ;;  %s668_s11 = sld [smem:[#allocation2 + $0x11]]  ;;  %s672_s12 = sld [smem:[#allocation2 + $0x1b]] }
  0x33   :  { %v66_v59 = vmul.f32 %v65_v35, %v63_v47  ;;  %v145_v61 = vrot.slane %v143_v53, 2  ;;  %v164_v62 = vstv %s596_s22  ;;  %v122_v63 = vadd.f32 %v120_v44, %v115_v55  ;;  %s674_s13 = sld [smem:[#allocation2 + $0x37]]  ;;  %s677_s14 = sld [smem:[#allocation2 + $0x25]] }
  0x34   :  { %v94_v60 = vmax.f32 %v93_v51, 0.0  ;;  %v140_v1 = vadd.f32 %v138_v57, %v133_v45  ;;  %v152_v2 = vrot.slane %v150_v58, 3  ;;  %v165_v3 = vmul.f32 %v164_v62, %v551_v0  ;;  %s680_s15 = sld [smem:[#allocation2 + $0x2e]]  ;;  %s685_s16 = sld [smem:[#allocation2 + $0x8]] }
  0x35   :  { %v167_v5 = vstv %s601_s23  ;;  %v174_v6 = vstv %s606_s24  ;;  %v181_v7 = vstv %s608_s25  ;;  %v125_v8 = vadd.f32 %v124_v56, %v122_v63  ;;  %s690_s17 = sld [smem:[#allocation2 + $0x12]]  ;;  %s694_s18 = sld [smem:[#allocation2 + $0x1c]] }
  0x36   :  { %v97_v4 = vmul.f32 %v96_v52, %v94_v60  ;;  %v147_v9 = vadd.f32 %v145_v61, %v140_v1  ;;  %v168_v10 = vmul.f32 %v167_v5, %v551_v0  ;;  %v175_v11 = vmul.f32 %v174_v6, %v551_v0  ;;  %s696_s19 = sld [smem:[#allocation2 + $0x26]]  ;;  %s699_s20 = sld [smem:[#allocation2 + $0x38]] }
  0x37   :  { %v128_v12 = vstv %s610_s26  ;;  %v156_v13 = vstv %s615_s27  ;;  %v160_v14 = vstv %s617_s28  ;;  %v182_v15 = vmul.f32 %v181_v7, %v551_v0  ;;  %s703_s21 = sld [smem:[#allocation2 + $0x2f]]  ;;  %s707_s22 = sld [smem:[#allocation2 + $0x9]] }
  0x38   :  { %v126_v16 = vmax.f32 %v125_v8, 0.0  ;;  %v154_v17 = vadd.f32 %v152_v2, %v147_v9  ;;  %v170_v18 = vrot.slane %v168_v10, 1  ;;  %v177_v19 = vrot.slane %v175_v11, 2  ;;  %s712_s23 = sld [smem:[#allocation2 + $0x13]]  ;;  %s714_s24 = sld [smem:[#allocation2 + $0x1d]] }
  0x39   :  { %v98_v20 = vadd.f32 %v97_v4, %v66_v59  ;;  %v196_v21 = vstv %s621_s0  ;;  %v199_v22 = vstv %s626_s29  ;;  %v206_v23 = vstv %s628_s30  ;;  %s719_s25 = sld [smem:[#allocation2 + $0x27]]  ;;  %s721_s26 = sld [smem:[#allocation2 + $0x39]] }
  0x3a   :  { %v129_v24 = vmul.f32 %v128_v12, %v126_v16  ;;  %v157_v25 = vadd.f32 %v156_v13, %v154_v17  ;;  %v172_v26 = vadd.f32 %v170_v18, %v165_v3  ;;  %v184_v27 = vrot.slane %v182_v15, 3  ;;  %s727_s27 = sld [smem:[#allocation2 + $0x30]]  ;;  %s734_s28 = sld [smem:[#allocation2 + $0x3a]] }
  0x3b   :  { %v197_v28 = vmul.f32 %v196_v21, %v551_v0  ;;  %v200_v29 = vmul.f32 %v199_v22, %v551_v0  ;;  %v207_v30 = vmul.f32 %v206_v23, %v551_v0  ;;  %v213_v31 = vstv %s633_s3  ;;  %s437_s0 = sld [smem:[#allocation2 + $0x31]]  ;;  %s438_s29 = sld [smem:[#allocation2 + $0x3b]] }
  0x3c   :  { %v158_v32 = vmax.f32 %v157_v25, 0.0  ;;  %v179_v33 = vadd.f32 %v177_v19, %v172_v26  ;;  %v188_v34 = vstv %s636_s4  ;;  %v214_v35 = vmul.f32 %v213_v31, %v551_v0  ;;  %s439_s30 = sld [smem:[#allocation2 + $0x3c]]  ;;  %s509_s3 = smov [#allocation7]  }
  0x3d   :  { %v130_v36 = vadd.f32 %v129_v24, %v98_v20  ;;  %v202_v37 = vrot.slane %v200_v29, 1  ;;  %v209_v38 = vrot.slane %v207_v30, 2  ;;  %v228_v39 = vstv %s641_s5  ;;  %s370_s4 = sshll.u32 %s509_s3, 4  ;;  %s371_s4 = int_to_ptr.vmem [resolvable:$true] %s370_s4 }
  0x3e   :  { %v161_v40 = vmul.f32 %v160_v14, %v158_v32  ;;  %v186_v41 = vadd.f32 %v184_v27, %v179_v33  ;;  %v192_v42 = vstv %s645_s6  ;;  %v216_v43 = vrot.slane %v214_v35, 3  ;;  %s479_s5 = scalar_lea.vmem %s371_s4, 16  ;;  %s483_s6 = scalar_lea.vmem %s371_s4, 32 }
  0x3f   :  { %v204_v44 = vadd.f32 %v202_v37, %v197_v28  ;;  %v231_v45 = vstv %s647_s7  ;;  %v238_v46 = vstv %s653_s8  ;;  %v245_v47 = vstv %s655_s9  ;;  %p480_p11 = scmp.ne.s32.totalorder %s371_s4, %s479_s5  ;;  %p484_p12 = scmp.lt.s32.totalorder %s371_s4, %s371_s4 }
  0x40   :  { %v189_v48 = vadd.f32 %v188_v34, %v186_v41  ;;  %v229_v49 = vmul.f32 %v228_v39, %v551_v0  ;;  %v232_v50 = vmul.f32 %v231_v45, %v551_v0  ;;  %v239_v51 = vmul.f32 %v238_v46, %v551_v0  ;;  %p485_p13 = scmp.lt.s32.totalorder %s483_s6, %s479_s5 }
  0x41   :  { %v162_v52 = vadd.f32 %v161_v40, %v130_v36  ;;  %v211_v53 = vadd.f32 %v209_v38, %v204_v44  ;;  %v220_v54 = vstv %s660_s10  ;;  %v246_v55 = vmul.f32 %v245_v47, %v551_v0 }
  0x42   :  { %v190_v56 = vmax.f32 %v189_v48, 0.0  ;;  %v234_v57 = vrot.slane %v232_v50, 1  ;;  %v241_v58 = vrot.slane %v239_v51, 2  ;;  %v260_v59 = vstv %s662_s1  ;;  %p486_p0 = por %p485_p13, %p484_p12 }
  0x43   :  { %v218_v60 = vadd.f32 %v216_v43, %v211_v53  ;;  %v248_v61 = vrot.slane %v246_v55, 3  ;;  %v261_v62 = vmul.f32 %v260_v59, %v551_v0  ;;  %v263_v63 = vstv %s668_s11 }
  0x44   :  { %v193_v1 = vmul.f32 %v192_v42, %v190_v56  ;;  %v236_v2 = vadd.f32 %v234_v57, %v229_v49  ;;  %v264_v3 = vmul.f32 %v263_v63, %v551_v0  ;;  %v270_v4 = vstv %s672_s12  ;;  %p487_p1 = pnand %p486_p0, %p480_p11 }
  0x45   :  { %v221_v5 = vadd.f32 %v220_v54, %v218_v60  ;;  %v224_v6 = vstv %s674_s13  ;;  %v271_v7 = vmul.f32 %v270_v4, %v551_v0  ;;  %v277_v8 = vstv %s677_s14 }
  0x46   :  { %v243_v9 = vadd.f32 %v241_v58, %v236_v2  ;;  %v252_v10 = vstv %s680_s15  ;;  %v266_v11 = vrot.slane %v264_v3, 1  ;;  %v278_v12 = vmul.f32 %v277_v8, %v551_v0 }
  0x47   :  { %v194_v13 = vadd.f32 %v193_v1, %v162_v52  ;;  %v222_v14 = vmax.f32 %v221_v5, 0.0  ;;  %v273_v15 = vrot.slane %v271_v7, 2  ;;  %v292_v16 = vstv %s685_s16 }
  0x48   :  { %v250_v17 = vadd.f32 %v248_v61, %v243_v9  ;;  %v268_v18 = vadd.f32 %v266_v11, %v261_v62  ;;  %v280_v19 = vrot.slane %v278_v12, 3  ;;  %v293_v20 = vmul.f32 %v292_v16, %v551_v0 }
  0x49   :  { %v225_v21 = vmul.f32 %v224_v6, %v222_v14  ;;  %v295_v22 = vstv %s690_s17  ;;  %v302_v23 = vstv %s694_s18  ;;  %v309_v24 = vstv %s696_s19 }
  0x4a   :  { %v253_v25 = vadd.f32 %v252_v10, %v250_v17  ;;  %v275_v26 = vadd.f32 %v273_v15, %v268_v18  ;;  %v296_v27 = vmul.f32 %v295_v22, %v551_v0  ;;  %v303_v28 = vmul.f32 %v302_v23, %v551_v0 }
  0x4b   :  { %v256_v29 = vstv %s699_s20  ;;  %v284_v30 = vstv %s703_s21  ;;  %v310_v31 = vmul.f32 %v309_v24, %v551_v0  ;;  %v226_v36 = vadd.f32 %v225_v21, %v194_v13 }
  0x4c   :  { %v254_v32 = vmax.f32 %v253_v25, 0.0  ;;  %v282_v33 = vadd.f32 %v280_v19, %v275_v26  ;;  %v298_v34 = vrot.slane %v296_v27, 1  ;;  %v305_v35 = vrot.slane %v303_v28, 2 }
  0x4d   :  { %v324_v37 = vstv %s707_s22  ;;  %v327_v38 = vstv %s712_s23  ;;  %v334_v39 = vstv %s714_s24  ;;  %v312_v43 = vrot.slane %v310_v31, 3 }
  0x4e   :  { %v257_v40 = vmul.f32 %v256_v29, %v254_v32  ;;  %v285_v41 = vadd.f32 %v284_v30, %v282_v33  ;;  %v300_v42 = vadd.f32 %v298_v34, %v293_v20  ;;  %v325_v44 = vmul.f32 %v324_v37, %v551_v0 }
  0x4f   :  { %v328_v45 = vmul.f32 %v327_v38, %v551_v0  ;;  %v335_v46 = vmul.f32 %v334_v39, %v551_v0  ;;  %v341_v47 = vstv %s719_s25  ;;  %v288_v49 = vstv %s721_s26 }
  0x50   :  { %v286_v48 = vmax.f32 %v285_v41, 0.0  ;;  %v307_v50 = vadd.f32 %v305_v35, %v300_v42  ;;  %v342_v51 = vmul.f32 %v341_v47, %v551_v0  ;;  %v316_v52 = vstv %s727_s27 }
  0x51   :  { %v330_v53 = vrot.slane %v328_v45, 1  ;;  %v337_v54 = vrot.slane %v335_v46, 2  ;;  %v258_v56 = vadd.f32 %v257_v40, %v226_v36  ;;  %v320_v61 = vstv %s734_s28 }
  0x52   :  { %v314_v55 = vadd.f32 %v312_v43, %v307_v50  ;;  %v289_v57 = vmul.f32 %v288_v49, %v286_v48  ;;  %v344_v59 = vrot.slane %v342_v51, 3  ;;  %v348_v1 = vstv %s437_s0 }
  0x53   :  { %v332_v58 = vadd.f32 %v330_v53, %v325_v44  ;;  %v352_v0 = vstv %s438_s29  ;;  %v356_v9 = vstv %s439_s30 }
  0x54   :  { %v317_v60 = vadd.f32 %v316_v52, %v314_v55  ;;  %v290_v2 = vadd.f32 %v289_v57, %v258_v56 }
  0x55   :  { %v339_v62 = vadd.f32 %v337_v54, %v332_v58 }
  0x56   :  { %v318_v63 = vmax.f32 %v317_v60, 0.0 }
  0x57   :  { %v346_v3 = vadd.f32 %v344_v59, %v339_v62 }
  0x58   :  { %v321_v4 = vmul.f32 %v320_v61, %v318_v63 }
  0x59   :  { %v349_v5 = vadd.f32 %v348_v1, %v346_v3 }
  0x5a   :  { %v322_v6 = vadd.f32 %v321_v4, %v290_v2 }
  0x5b   :  { %v350_v7 = vmax.f32 %v349_v5, 0.0 }
  0x5d   :  { %v353_v8 = vmul.f32 %v352_v0, %v350_v7 }
  0x5f   :  { %v354_v10 = vadd.f32 %v353_v8, %v322_v6 }
  0x61   :  { %v357_v11 = vadd.f32 %v356_v9, %v354_v10 }
  0x63   :  { %v358_v12 = vsub.f32 0.0, %v357_v11 }
  0x65   :  { %v359_v13 = vmul.f32 1.442695, %v358_v12 }
  0x67   :  { %443 = vpow2.f32 %v359_v13 }
  0x71   :  { %v444_v14 = vpop.eup %443 }
  0x72   :  { %v361_v15 = vadd.f32 1.0, %v444_v14 }
  0x74   :  { %445 = vrcp.f32 %v361_v15 }
  0x7e   :  { %v446_v16 = vpop.eup %445 }
  0x7f   :  { %363 = vst [vmem:[#allocation7] sm:$0x1] %v446_v16 }
  0x80   :  { %490 = shalt.err (!%p487_p1)
}
  0x81   :  { %s491_s9 = scalar_lea.hbm %s761_s2, 16 }
  0x82   :  { %p492_p2 = scmp.ne.s32.totalorder %s761_s2, %s491_s9  ;;  %p495_p3 = scmp.lt.u32.totalorder %s491_s9, %s761_s2 }
  0x84   :  { %p497_p4 = pnand %p495_p3, %p492_p2 }
  0x86   :  { %500 = shalt.err (!%p497_p4)
}
  0x87   :  { %373 = dma.vmem_to_hbm [thread:$0]  %s371_s4, 16, %s761_s2, [#allocation4]  }
  0x88   :  { %505 = dma.done.wait [#allocation4], 16  }
  0x89   :  { %506 = vsyncadd [#allocation4], 4294967280 }
  0x8a   :  { %377 = vsyncpa [#allocation3], 1 }
  0x8b   :  { %378 = vsyncpa [#allocation4], 1 }
  0x8c   :  { %379 = vsyncpa [#allocation5], 1 }

</bundles_post_ra>
